<compile_context>
chip_gen: v7x
topology: tpu7x:2x2x1
jax: 0.10.0
libtpu: 0.0.40
codegen_flags: <defaults>
</compile_context>

<pallas_src>
import jax
import jax.numpy as jnp
from jax.experimental import pallas as pl
from jax.experimental.pallas import tpu as pltpu


def _round_up(x, m):
    return (x + m - 1) // m * m


def funksvd_kernel(user_ref, item_ref, out_ref):
    # user_ref: (K, tb), item_ref: (N1, K, tb), out_ref: (N1, tb)
    u = user_ref[...]                      # (K, tb) f32, batch on lanes
    it = item_ref[...]                     # (N1, K, tb) f32
    # score[n, b] = sum_k item[n, k, b] * user[k, b]  (sublane reduce over K)
    out_ref[...] = jnp.sum(it * u[None, :, :], axis=1)


def _choose_tb(batch, n1, k_dim):
    # Size the tile so the double-buffered dominant (n1, K, tb) f32 item block
    # stays ~4 MiB per buffer (fits v5e 16 MiB scoped, v7x 64 MiB physical).
    budget = 4 * 1024 * 1024
    bytes_per_row = 4 * (n1 * k_dim + k_dim + n1)
    tb = (budget // bytes_per_row) // 128 * 128
    tb = max(128, min(512, tb))
    # Don't pad a small batch further than the next lane-aligned multiple.
    tb = min(tb, _round_up(batch, 128))
    return tb


def funksvd_forward(emb_user, emb_item, user, pos_item, neg_item=None, *, tb=None):
    """FunkSVD forward.

    emb_user: (n_user, K) f32, emb_item: (n_item, K) f32
    user, pos_item: int32 (B,), neg_item: int32 (B, N) or None
    returns: (B + B*N,) f32 if neg_item is given (cat([pos_rat, neg_rat])),
             else (B,) f32 equal to -pos_rat.
    """
    B = user.shape[0]
    K = emb_user.shape[1]

    if neg_item is None:
        items_idx = pos_item[:, None]                      # (B, 1)
    else:
        items_idx = jnp.concatenate([pos_item[:, None], neg_item], axis=1)  # (B, N+1)
    N1 = items_idx.shape[1]

    if tb is None:
        tb = _choose_tb(B, N1, K)
    assert tb % 128 == 0, "tb must be a multiple of 128 (lane-dense blocks)"
    B_pad = _round_up(B, tb)

    # Pad the batch to a multiple of tb (index 0 rows; results are sliced off).
    if B_pad != B:
        pad = B_pad - B
        user = jnp.concatenate([user, jnp.zeros((pad,), user.dtype)], axis=0)
        items_idx = jnp.concatenate(
            [items_idx, jnp.zeros((pad, N1), items_idx.dtype)], axis=0
        )

    # Embedding gathers + transpose to the lane-dense (batch-on-lanes) layout.
    # TODO(synk): the gathered item embeddings are still materialized in HBM
    # and re-read by the kernel; for large tables, gathering inside the kernel
    # (scalar-prefetched indices + DMA/VMEM-resident table) would cut the
    # dominant HBM traffic roughly in half.
    user_emb_t = emb_user[user].T                                   # (K, B_pad)
    item_emb_t = jnp.transpose(emb_item[items_idx], (1, 2, 0))      # (N1, K, B_pad)

    scores = pl.pallas_call(
        funksvd_kernel,
        out_shape=jax.ShapeDtypeStruct((N1, B_pad), jnp.float32),
        grid_spec=pltpu.PrefetchScalarGridSpec(
            num_scalar_prefetch=0,
            grid=(B_pad // tb,),
            in_specs=[
                pl.BlockSpec((K, tb), lambda i: (0, i)),
                pl.BlockSpec((N1, K, tb), lambda i: (0, 0, i)),
            ],
            out_specs=pl.BlockSpec((N1, tb), lambda i: (0, i)),
        ),
        compiler_params=pltpu.CompilerParams(
            dimension_semantics=("parallel",),
            vmem_limit_bytes=32 * 1024 * 1024,
        ),
    )(user_emb_t, item_emb_t)

    pos_rat = scores[0, :B]                                         # (B,)
    if neg_item is None:
        return -pos_rat
    # torch: neg_rat is (B, N) flattened b-major, negated.
    neg_rat = -scores[1:, :B].T.reshape(-1)                         # (B*N,)
    return jnp.concatenate([pos_rat, neg_rat], axis=0)


if __name__ == "__main__":
    key = jax.random.PRNGKey(0)
    k_user, k_item, k_u, k_p, k_n = jax.random.split(key, 5)

    n_user, n_item, k_dim = 16, 32, 32   # small, consistent with FunkSVD.__init__
    B, N = 8, 4                          # batch and #negative samples per user

    # Deterministic "uniform_(0, 1)" init of the two embedding tables.
    emb_user = jax.random.uniform(k_user, (n_user, k_dim), dtype=jnp.float32)
    emb_item = jax.random.uniform(k_item, (n_item, k_dim), dtype=jnp.float32)

    user = jax.random.randint(k_u, (B,), 0, n_user, dtype=jnp.int32)
    pos_item = jax.random.randint(k_p, (B,), 0, n_item, dtype=jnp.int32)
    neg_item = jax.random.randint(k_n, (B, N), 0, n_item, dtype=jnp.int32)

    # negative_sampling=True path
    out = funksvd_forward(emb_user, emb_item, user, pos_item, neg_item)
    out = jax.block_until_ready(out)

    # Pure-JAX reference check of the forward semantics.
    u_e = emb_user[user]
    pos_ref = jnp.sum(u_e * emb_item[pos_item], axis=1)
    neg_ref = -jnp.einsum("bnk,bk->bn", emb_item[neg_item], u_e).reshape(-1)
    ref = jnp.concatenate([pos_ref, neg_ref], axis=0)
    assert out.shape == (B + B * N,)
    assert jnp.allclose(out, ref, atol=1e-5, rtol=1e-5)

    # negative_sampling=False path
    out_ns = jax.block_until_ready(
        funksvd_forward(emb_user, emb_item, user, pos_item, None)
    )
    assert out_ns.shape == (B,)
    assert jnp.allclose(out_ns, -pos_ref, atol=1e-5, rtol=1e-5)

    print("KERNEL_OK")
</pallas_src>

<mosaic_0001>
module attributes {stable_mosaic.version = 11 : i64} {
  func.func @funksvd_kernel(%arg0: i32, %arg1: memref<32x128xf32, #tpu.memory_space<vmem>>, %arg2: memref<5x32x128xf32, #tpu.memory_space<vmem>>, %arg3: memref<5x128xf32, #tpu.memory_space<vmem>>) attributes {dimension_semantics = [#tpu.dimension_semantics<parallel>], iteration_bounds = array<i64: 1>, scalar_prefetch = 0 : i64, scratch_operands = 0 : i64, tpu.core_type = #tpu.core_type<tc>, window_params = [{transform_indices = @transform_0, window_bounds = array<i64: 32, 128>}, {transform_indices = @transform_1, window_bounds = array<i64: 5, 32, 128>}, {transform_indices = @transform_2, window_bounds = array<i64: 5, 128>}]} {
    %c0 = arith.constant 0 : index
    %c0_0 = arith.constant 0 : index
    %0 = vector.load %arg1[%c0, %c0_0] : memref<32x128xf32, #tpu.memory_space<vmem>>, vector<32x128xf32>
    %c0_1 = arith.constant 0 : index
    %c0_2 = arith.constant 0 : index
    %c0_3 = arith.constant 0 : index
    %1 = vector.load %arg2[%c0_1, %c0_2, %c0_3] : memref<5x32x128xf32, #tpu.memory_space<vmem>>, vector<5x32x128xf32>
    %2 = vector.shape_cast %0 : vector<32x128xf32> to vector<1x32x128xf32>
    %3 = vector.broadcast %2 : vector<1x32x128xf32> to vector<5x32x128xf32>
    %4 = arith.mulf %1, %3 : vector<5x32x128xf32>
    %cst = arith.constant dense<0.000000e+00> : vector<5x128xf32>
    %5 = vector.multi_reduction <add>, %4, %cst [1] : vector<5x32x128xf32> to vector<5x128xf32>
    %c0_4 = arith.constant 0 : index
    %c0_5 = arith.constant 0 : index
    %6 = vector.load %arg3[%c0_4, %c0_5] : memref<5x128xf32, #tpu.memory_space<vmem>>, vector<5x128xf32>
    tpu.vector_store %arg3[%c0_4, %c0_5], %5 {strides = array<i32>} : memref<5x128xf32, #tpu.memory_space<vmem>>, vector<5x128xf32>,
    return
  }
  func.func @transform_0(%arg0: i32) -> (i32, i32) {
    %c0_i32 = arith.constant 0 : i32
    %c0_i32_0 = arith.constant 0 : i32
    return %c0_i32, %arg0 : i32, i32
  }
  func.func @transform_1(%arg0: i32) -> (i32, i32, i32) {
    %c0_i32 = arith.constant 0 : i32
    %c0_i32_0 = arith.constant 0 : i32
    %c0_i32_1 = arith.constant 0 : i32
    return %c0_i32, %c0_i32_0, %arg0 : i32, i32, i32
  }
  func.func @transform_2(%arg0: i32) -> (i32, i32) {
    %c0_i32 = arith.constant 0 : i32
    %c0_i32_0 = arith.constant 0 : i32
    return %c0_i32, %arg0 : i32, i32
  }
}

</mosaic_0001>

<bundles_post_ra>
// kernel: tpu_custom_call.1
= control target key start
LH: loop header
LB: loop body
LE: loop exit
PB: predicated region body
PF: predicated region fallthrough
CT: control target
= control target key end

     0   :  { %7 = vsyncpa [#allocation3], 0  ;;  %s293_s0 = inlined_call_operand.hbm [shape: f32[32,128], index: 0, kind: input, shape index: {}]   ;;  %s294_s1 = inlined_call_operand.hbm [shape: f32[5,32,128], index: 1, kind: input, shape index: {}]   ;;  %s295_s2 = inlined_call_operand.hbm [shape: f32[5,128], index: 2, kind: output, shape index: {}]  }
   0x1   :  { %8 = vsyncpa [#allocation6], 0 }
   0x2   :  { %9 = vsyncpa [#allocation4], 0  ;;  %s237_s9 = smov [#allocation2]   ;;  %s165_s13 = scalar_lea.hbm %s293_s0, 512 }
   0x3   :  { %s15_s10 = sshll.u32 %s237_s9, 4  ;;  %p166_p0 = scmp.ne.s32.totalorder %s293_s0, %s165_s13  ;;  %s16_s10 = int_to_ptr.vmem [resolvable:$true] %s15_s10 }
   0x4   :  { %p169_p1 = scmp.lt.u32.totalorder %s165_s13, %s293_s0 }
   0x6   :  { %p171_p2 = pnand %p169_p1, %p166_p0 }
   0x8   :  { %174 = shalt.err (!%p171_p2)
}
   0x9   :  { %s175_s18 = scalar_lea.vmem %s16_s10, 512  ;;  %p180_p4 = scmp.lt.s32.totalorder %s16_s10, %s16_s10 }
   0xa   :  { %p176_p3 = scmp.ne.s32.totalorder %s16_s10, %s175_s18  ;;  %p181_p5 = scmp.lt.s32.totalorder %s175_s18, %s175_s18 }
   0xc   :  { %p182_p6 = por %p181_p5, %p180_p4 }
   0xe   :  { %p183_p7 = pnand %p182_p6, %p176_p3 }
  0x10   :  { %186 = shalt.err (!%p183_p7)
}
  0x11   :  { %s238_s19 = smov 128   ;;  %s239_s20 = smov 8  }
  0x12   :  { %21 = dma.hbm_to_vmem [thread:$0]  %s293_s0, 512, %s16_s10, [#allocation3], %s238_s19, %s238_s19, %s239_s20  }
  0x13   :  { %s240_s23 = smov [#allocation5]   ;;  %s187_s27 = scalar_lea.hbm %s294_s1, 2560 }
  0x14   :  { %s27_s24 = sshll.u32 %s240_s23, 4  ;;  %p188_p8 = scmp.ne.s32.totalorder %s294_s1, %s187_s27  ;;  %s28_s24 = int_to_ptr.vmem [resolvable:$true] %s27_s24 }
  0x15   :  { %p191_p9 = scmp.lt.u32.totalorder %s187_s27, %s294_s1 }
  0x17   :  { %p193_p10 = pnand %p191_p9, %p188_p8 }
  0x19   :  { %196 = shalt.err (!%p193_p10)
}
  0x1a   :  { %s197_s4 = scalar_lea.vmem %s28_s24, 2560  ;;  %p202_p12 = scmp.lt.s32.totalorder %s28_s24, %s28_s24 }
  0x1b   :  { %p198_p11 = scmp.ne.s32.totalorder %s28_s24, %s197_s4  ;;  %p203_p13 = scmp.lt.s32.totalorder %s197_s4, %s197_s4 }
  0x1d   :  { %p204_p0 = por %p203_p13, %p202_p12 }
  0x1f   :  { %p205_p1 = pnand %p204_p0, %p198_p11 }
  0x21   :  { %208 = shalt.err (!%p205_p1)
}
  0x22   :  { %33 = dma.hbm_to_vmem [thread:$0]  %s294_s1, 2560, %s28_s24, [#allocation6], %s238_s19, %s238_s19, %s239_s20  }
  0x23   :  { %231 = dma.done.wait [#allocation3], 512  }
  0x24   :  { %232 = vsyncadd [#allocation3], 4294966784 }
  0x25   :  { %233 = dma.done.wait [#allocation6], 2560  }
  0x26   :  { %234 = vsyncadd [#allocation6], 4294964736  ;;  %v40_v0 = vld [vmem:[#allocation2] sm:$0xff]  ;;  %v41_v1 = vld [vmem:[#allocation2 + $0x8] sm:$0xff]  ;;  %vm134_vm0 = vcmask 1041409   ;;  %vm136_vm1 = vcmask 1042434  }
  0x27   :  { %v42_v2 = vld [vmem:[#allocation2 + $0x10] sm:$0xff]  ;;  %v43_v3 = vld [vmem:[#allocation2 + $0x18] sm:$0xff]  ;;  %v44_v4 = vld [vmem:[#allocation5] sm:$0xff]  ;;  %vm138_vm2 = vcmask 1043459   ;;  %s241_s1 = smov [#allocation7]   ;;  %vm140_vm3 = vcmask 1044484  }
  0x28   :  { %v45_v5 = vld [vmem:[#allocation5 + $0x8] sm:$0xff]  ;;  %v46_v6 = vld [vmem:[#allocation5 + $0x10] sm:$0xff]  ;;  %v47_v7 = vld [vmem:[#allocation5 + $0x18] sm:$0xff]  ;;  %v64_v9 = vmul.f32 %v44_v4, %v40_v0  ;;  %s150_s6 = sshll.u32 %s241_s1, 4  ;;  %s151_s6 = int_to_ptr.vmem [resolvable:$true] %s150_s6 }
  0x29   :  { %v48_v8 = vld [vmem:[#allocation5 + $0x20] sm:$0xff]  ;;  %v65_v10 = vmul.f32 %v45_v5, %v41_v1  ;;  %v49_v11 = vld [vmem:[#allocation5 + $0x28] sm:$0xff]  ;;  %v50_v12 = vld [vmem:[#allocation5 + $0x30] sm:$0xff]  ;;  %v66_v14 = vmul.f32 %v46_v6, %v42_v2  ;;  %v67_v19 = vmul.f32 %v47_v7, %v43_v3  ;;  %s209_s7 = scalar_lea.vmem %s151_s6, 128  ;;  %p214_p3 = scmp.lt.s32.totalorder %s151_s6, %s151_s6 }
  0x2a   :  { %v51_v13 = vld [vmem:[#allocation5 + $0x38] sm:$0xff]  ;;  %v68_v15 = vmul.f32 %v48_v8, %v40_v0  ;;  %v52_v16 = vld [vmem:[#allocation5 + $0x40] sm:$0xff]  ;;  %v53_v17 = vld [vmem:[#allocation5 + $0x48] sm:$0xff]  ;;  %v69_v20 = vmul.f32 %v49_v11, %v41_v1  ;;  %v70_v25 = vmul.f32 %v50_v12, %v42_v2  ;;  %p210_p2 = scmp.ne.s32.totalorder %s151_s6, %s209_s7  ;;  %p215_p4 = scmp.lt.s32.totalorder %s209_s7, %s209_s7 }
  0x2b   :  { %v54_v18 = vld [vmem:[#allocation5 + $0x50] sm:$0xff]  ;;  %v84_v21 = vadd.f32 %v65_v10, %v64_v9  ;;  %v55_v22 = vld [vmem:[#allocation5 + $0x58] sm:$0xff]  ;;  %v56_v23 = vld [vmem:[#allocation5 + $0x60] sm:$0xff]  ;;  %v72_v26 = vmul.f32 %v52_v16, %v40_v0  ;;  %v73_v27 = vmul.f32 %v53_v17, %v41_v1  ;;  %v71_v31 = vmul.f32 %v51_v13, %v43_v3 }
  0x2c   :  { %v57_v24 = vld [vmem:[#allocation5 + $0x68] sm:$0xff]  ;;  %v58_v28 = vld [vmem:[#allocation5 + $0x70] sm:$0xff]  ;;  %v59_v29 = vld [vmem:[#allocation5 + $0x78] sm:$0xff]  ;;  %v76_v32 = vmul.f32 %v56_v23, %v40_v0  ;;  %v74_v38 = vmul.f32 %v54_v18, %v42_v2  ;;  %v93_v41 = vadd.f32 %v69_v20, %v68_v15  ;;  %v75_v42 = vmul.f32 %v55_v22, %v43_v3  ;;  %p216_p5 = por %p215_p4, %p214_p3 }
  0x2d   :  { %v60_v30 = vld [vmem:[#allocation5 + $0x80] sm:$0xff]  ;;  %v77_v33 = vmul.f32 %v57_v24, %v41_v1  ;;  %v85_v34 = vadd.f32 %v84_v21, %v66_v14  ;;  %v61_v35 = vld [vmem:[#allocation5 + $0x88] sm:$0xff]  ;;  %v62_v36 = vld [vmem:[#allocation5 + $0x90] sm:$0xff]  ;;  %v78_v39 = vmul.f32 %v58_v28, %v42_v2  ;;  %v79_v46 = vmul.f32 %v59_v29, %v43_v3 }
  0x2e   :  { %v63_v37 = vld [vmem:[#allocation5 + $0x98] sm:$0xff]  ;;  %v80_v40 = vmul.f32 %v60_v30, %v40_v0  ;;  %v81_v43 = vmul.f32 %v61_v35, %v41_v1  ;;  %v82_v44 = vmul.f32 %v62_v36, %v42_v2  ;;  %v94_v47 = vadd.f32 %v93_v41, %v70_v25  ;;  %p217_p6 = pnand %p216_p5, %p210_p2 }
  0x2f   :  { %v86_v45 = vadd.f32 %v85_v34, %v67_v19  ;;  %v102_v48 = vadd.f32 %v73_v27, %v72_v26  ;;  %v111_v49 = vadd.f32 %v77_v33, %v76_v32  ;;  %v83_v50 = vmul.f32 %v63_v37, %v43_v3 }
  0x30   :  { %v120_v52 = vadd.f32 %v81_v43, %v80_v40  ;;  %v95_v53 = vadd.f32 %v94_v47, %v71_v31 }
  0x31   :  { %v87_v51 = vrot.slane %v86_v45, 4  ;;  %v103_v54 = vadd.f32 %v102_v48, %v74_v38  ;;  %v112_v55 = vadd.f32 %v111_v49, %v78_v39 }
  0x32   :  { %v121_v57 = vadd.f32 %v120_v52, %v82_v44  ;;  %v96_v58 = vrot.slane %v95_v53, 4 }
  0x33   :  { %v88_v56 = vadd.f32 %v87_v51, %v86_v45  ;;  %v104_v59 = vadd.f32 %v103_v54, %v75_v42  ;;  %v113_v60 = vadd.f32 %v112_v55, %v79_v46 }
  0x34   :  { %v122_v62 = vadd.f32 %v121_v57, %v83_v50  ;;  %v97_v63 = vadd.f32 %v96_v58, %v95_v53 }
  0x35   :  { %v89_v61 = vrot.slane %v88_v56, 2  ;;  %v105_v0 = vrot.slane %v104_v59, 4  ;;  %v114_v1 = vrot.slane %v113_v60, 4 }
  0x36   :  { %v123_v4 = vrot.slane %v122_v62, 4  ;;  %v98_v5 = vrot.slane %v97_v63, 2 }
  0x37   :  { %v90_v2 = vadd.f32 %v89_v61, %v88_v56  ;;  %v106_v6 = vadd.f32 %v105_v0, %v104_v59  ;;  %v115_v3 = vadd.f32 %v114_v1, %v113_v60 }
  0x38   :  { %v124_v8 = vadd.f32 %v123_v4, %v122_v62  ;;  %v99_v9 = vadd.f32 %v98_v5, %v97_v63 }
  0x39   :  { %v91_v7 = vrot.slane %v90_v2, 1  ;;  %v107_v10 = vrot.slane %v106_v6, 2  ;;  %v116_v11 = vrot.slane %v115_v3, 2 }
  0x3a   :  { %v125_v12 = vrot.slane %v124_v8, 2  ;;  %v100_v14 = vrot.slane %v99_v9, 1 }
  0x3b   :  { %v92_v13 = vadd.f32 %v91_v7, %v90_v2  ;;  %v108_v15 = vadd.f32 %v107_v10, %v106_v6  ;;  %v117_v16 = vadd.f32 %v116_v11, %v115_v3 }
  0x3c   :  { %v126_v17 = vadd.f32 %v125_v12, %v124_v8  ;;  %v101_v18 = vadd.f32 %v100_v14, %v99_v9 }
  0x3d   :  { %v109_v19 = vrot.slane %v108_v15, 1  ;;  %v118_v20 = vrot.slane %v117_v16, 1 }
  0x3e   :  { %v127_v21 = vrot.slane %v126_v17, 1  ;;  %v135_v24 = vsel %vm134_vm0, %v101_v18, %v92_v13 }
  0x3f   :  { %v110_v22 = vadd.f32 %v109_v19, %v108_v15  ;;  %v119_v23 = vadd.f32 %v118_v20, %v117_v16 }
  0x40   :  { %v128_v25 = vadd.f32 %v127_v21, %v126_v17 }
  0x41   :  { %v137_v26 = vsel %vm136_vm1, %v110_v22, %v135_v24 }
  0x42   :  { %v139_v27 = vsel %vm138_vm2, %v119_v23, %v137_v26 }
  0x43   :  { %v141_v28 = vsel %vm140_vm3, %v128_v25, %v139_v27 }
  0x44   :  { %143 = vst [vmem:[#allocation7] sm:$0x1f] %v141_v28 }
  0x45   :  { %220 = shalt.err (!%p217_p6)
}
  0x46   :  { %s221_s10 = scalar_lea.hbm %s295_s2, 128 }
  0x47   :  { %p222_p7 = scmp.ne.s32.totalorder %s295_s2, %s221_s10  ;;  %p225_p8 = scmp.lt.u32.totalorder %s221_s10, %s295_s2 }
  0x49   :  { %p227_p9 = pnand %p225_p8, %p222_p7 }
  0x4b   :  { %230 = shalt.err (!%p227_p9)
}
  0x4c   :  { %153 = dma.vmem_to_hbm [thread:$0]  %s151_s6, 128, %s295_s2, [#allocation4]  }
  0x4d   :  { %235 = dma.done.wait [#allocation4], 128  }
  0x4e   :  { %236 = vsyncadd [#allocation4], 4294967168 }
  0x4f   :  { %157 = vsyncpa [#allocation3], 1 }
  0x50   :  { %158 = vsyncpa [#allocation6], 1 }
  0x51   :  { %159 = vsyncpa [#allocation4], 1 }

</bundles_post_ra>
